<compile_context>
chip_gen: v6e
topology: v6e:2x2x1
jax: 0.10.0
libtpu: 0.0.40
codegen_flags: <defaults>
</compile_context>

<pallas_src>
import math

import jax
import jax.numpy as jnp
from jax.experimental import pallas as pl
from jax.experimental.pallas import tpu as pltpu


# --------------------------------------------------------------------------- #
# Kernel body
# --------------------------------------------------------------------------- #
def _scale_kernel(f_ref, x_ref, o_ref):
    # f_ref is either (tm, 1) (per-row factor) or (1, tl) (per-lane factor);
    # both broadcast against the (tm, tl) x tile.  Factors are f32, so the
    # product is computed in f32 and cast once to the output dtype.
    o_ref[...] = (x_ref[...] * f_ref[...]).astype(o_ref.dtype)


# --------------------------------------------------------------------------- #
# Tiling helpers
# --------------------------------------------------------------------------- #
def _sublane_multiple(dtype):
    # Sub-32-bit dtypes pack along sublanes: one bf16 vreg is [16,128], int8 [32,128].
    return {4: 8, 2: 16, 1: 32}.get(jnp.dtype(dtype).itemsize, 8)


def _vmem_budget():
    """Per-block byte budget + scoped-VMEM limit, chip-aware with safe fallback."""
    cap = 64 << 20  # conservative fallback == v7x per-TC physical VMEM
    try:
        info = pltpu.get_tpu_info()
        cap = int(getattr(info, "vmem_capacity_bytes", cap))
    except Exception:
        pass
    limit = min(cap * 3 // 4, 96 << 20)            # leave headroom under physical
    block = max(1 << 20, min(8 << 20, limit // 6))  # x+out double-buffered ~4x block
    return block, limit


def _is_megacore():
    """Best-effort: does this device expose 2 TensorCores (v4/v5p megacore, v7x)?"""
    try:
        kind = jax.devices()[0].device_kind.lower()
    except Exception:
        return False
    return any(tag in kind for tag in ("v4", "v5p", "v7", "7x"))


# --------------------------------------------------------------------------- #
# Pallas wrapper: elementwise-scale a 2D slab by a broadcastable factor array
# --------------------------------------------------------------------------- #
def _pallas_scale(x2d, f2d, *, per_row):
    """per_row=True : f2d has shape (M, 1)  (factor per row)
       per_row=False: f2d has shape (1, W)  (factor per lane)"""
    m, w = x2d.shape
    itemsize = x2d.dtype.itemsize
    sub = _sublane_multiple(x2d.dtype)
    budget, vmem_limit = _vmem_budget()

    # Lane tile: keep the full row (contiguous block DMA, factor never re-fetched)
    # unless even a minimal-row full-width slab blows the budget; then split lanes
    # on 128-multiples (padded last block is legal).
    if sub * w * itemsize <= budget:
        tl = w
    else:
        tl = max(128, ((budget // (sub * itemsize)) // 128) * 128)

    # Rows per block from the remaining budget, rounded to the dtype sublane multiple.
    tm = max(sub, ((budget // max(1, tl * itemsize)) // sub) * sub)
    if tm >= m:
        if _is_megacore() and m >= 2 * sub:
            # Whole array fits one block: split rows so both TensorCores get
            # roughly equal work (round DOWN to the sublane multiple -> balanced
            # block counts even for odd m).
            tm = max(sub, ((m // 2) // sub) * sub)
        else:
            tm = m  # single-TC chip or tiny array: one full-extent block

    grid = (pl.cdiv(m, tm), pl.cdiv(w, tl))

    if per_row:
        f_spec = pl.BlockSpec((tm, 1), lambda i, j: (i, 0))
    else:
        f_spec = pl.BlockSpec((1, tl), lambda i, j: (0, j))

    # Only raise the scoped-VMEM limit when the double-buffered working set
    # actually exceeds the most conservative default scope (v5e: 16 MiB).
    need = 4 * tm * tl * itemsize + 4 * (tm + tl) * 4
    params = {"dimension_semantics": ("parallel", "parallel")}
    if need > (12 << 20):
        params["vmem_limit_bytes"] = vmem_limit

    return pl.pallas_call(
        _scale_kernel,
        out_shape=jax.ShapeDtypeStruct((m, w), x2d.dtype),
        grid_spec=pltpu.PrefetchScalarGridSpec(
            num_scalar_prefetch=0,
            grid=grid,
            in_specs=[
                f_spec,
                pl.BlockSpec((tm, tl), lambda i, j: (i, j)),
            ],
            out_specs=pl.BlockSpec((tm, tl), lambda i, j: (i, j)),
        ),
        compiler_params=pltpu.CompilerParams(**params),
    )(f2d, x2d)


# --------------------------------------------------------------------------- #
# Public op (matches LipschitzRescaling.forward)
# --------------------------------------------------------------------------- #
def lipschitz_rescaling(x, arc_sin_factors):
    width = arc_sin_factors.shape[0]
    # sin() hoisted out of the kernel; factors kept in f32 (single final cast
    # inside the kernel). f32 test path is bit-identical to the reference.
    factors = jnp.sin(arc_sin_factors.astype(jnp.float32))

    if x.ndim == 2:
        m, w = x.shape
        assert w == width
        if w >= 128:
            # Already lane-dense enough: full-width per-lane factor row.
            return _pallas_scale(x, factors.reshape(1, w), per_row=False)
        # Narrow width: repack to a lane-dense slab of width L = lcm(w, 128).
        # Pad a few rows if needed (cheap vs ~32x masked-store loss at w=4).
        L = (w * 128) // math.gcd(w, 128)
        rows_per_slab = L // w
        m_pad = pl.cdiv(m, rows_per_slab) * rows_per_slab
        x_p = x if m_pad == m else jnp.pad(x, ((0, m_pad - m), (0, 0)))
        x_ld = x_p.reshape((m_pad * w) // L, L)            # free row-major reshape
        f_row = jnp.tile(factors, L // w).reshape(1, L)    # repeating lane pattern
        y = _pallas_scale(x_ld, f_row, per_row=False).reshape(m_pad, w)
        return y[:m] if m_pad != m else y

    elif x.ndim == 4:
        n, c, h, w = x.shape
        assert c == width
        hw = h * w
        if hw % 128 == 0:
            # Free row-major reshape: row r of x2d is channel (r % c) of batch
            # (r // c); per-row factor column, lane-dense stores on H*W.
            x2d = x.reshape(n * c, hw)
            f_col = jnp.tile(factors, n).reshape(n * c, 1)
            y2d = _pallas_scale(x2d, f_col, per_row=True)
            return y2d.reshape(n, c, h, w)
        # Small / unaligned spatial extent: put C*H*W on lanes with a per-lane
        # repeated factor so stores stay as lane-dense as possible.
        x2d = x.reshape(n, c * hw)
        f_row = jnp.repeat(factors, hw).reshape(1, c * hw)
        y2d = _pallas_scale(x2d, f_row, per_row=False)
        return y2d.reshape(n, c, h, w)

    else:
        raise NotImplementedError


# --------------------------------------------------------------------------- #
# Self-test
# --------------------------------------------------------------------------- #
if __name__ == "__main__":
    key = jax.random.PRNGKey(0)
    k_param, k_x4, k_x2, k_x2b, k_x2w = jax.random.split(key, 5)

    width = 4  # == channels for the 4D case
    arc_sin_factors = 0.01 * jax.random.normal(k_param, (width,), dtype=jnp.float32)
    sinf = jnp.sin(arc_sin_factors)

    # 4D case: NCHW input (batch=2, channels=4, spatial=16) — per-row factor path.
    x4 = jax.random.normal(k_x4, (2, width, 16, 16), dtype=jnp.float32)
    y4 = jax.block_until_ready(lipschitz_rescaling(x4, arc_sin_factors))
    ref4 = x4 * sinf[None, :, None, None]
    assert y4.shape == x4.shape and y4.dtype == x4.dtype
    assert jnp.allclose(y4, ref4, atol=1e-6, rtol=1e-6)

    # 2D case: (batch=8, width=4) — narrow width, padded lane-dense repack path.
    x2 = jax.random.normal(k_x2, (8, width), dtype=jnp.float32)
    y2 = jax.block_until_ready(lipschitz_rescaling(x2, arc_sin_factors))
    ref2 = x2 * sinf[None, :]
    assert y2.shape == x2.shape and y2.dtype == x2.dtype
    assert jnp.allclose(y2, ref2, atol=1e-6, rtol=1e-6)

    # 2D case: (batch=64, width=4) — repack without any padding (64*4 = 2*128).
    x2b = jax.random.normal(k_x2b, (64, width), dtype=jnp.float32)
    y2b = jax.block_until_ready(lipschitz_rescaling(x2b, arc_sin_factors))
    ref2b = x2b * sinf[None, :]
    assert y2b.shape == x2b.shape and y2b.dtype == x2b.dtype
    assert jnp.allclose(y2b, ref2b, atol=1e-6, rtol=1e-6)

    # 2D case with a wide width (seq=8, hidden=256) — direct per-lane path.
    wide = 256
    arc_wide = 0.01 * jax.random.normal(k_param, (wide,), dtype=jnp.float32)
    x2w = jax.random.normal(k_x2w, (8, wide), dtype=jnp.float32)
    y2w = jax.block_until_ready(lipschitz_rescaling(x2w, arc_wide))
    ref2w = x2w * jnp.sin(arc_wide)[None, :]
    assert y2w.shape == x2w.shape and y2w.dtype == x2w.dtype
    assert jnp.allclose(y2w, ref2w, atol=1e-6, rtol=1e-6)

    print("KERNEL_OK")
</pallas_src>

<mosaic_0001>
module attributes {stable_mosaic.version = 11 : i64} {
  func.func @_scale_kernel(%arg0: i32, %arg1: i32, %arg2: memref<8x1xf32, #tpu.memory_space<vmem>>, %arg3: memref<8x256xf32, #tpu.memory_space<vmem>>, %arg4: memref<8x256xf32, #tpu.memory_space<vmem>>) attributes {dimension_semantics = [#tpu.dimension_semantics<parallel>, #tpu.dimension_semantics<parallel>], iteration_bounds = array<i64: 1, 1>, scalar_prefetch = 0 : i64, scratch_operands = 0 : i64, tpu.core_type = #tpu.core_type<tc>, window_params = [{transform_indices = @transform_0, window_bounds = array<i64: 8, 1>}, {transform_indices = @transform_1, window_bounds = array<i64: 8, 256>}, {transform_indices = @transform_2, window_bounds = array<i64: 8, 256>}]} {
    %c0 = arith.constant 0 : index
    %c0_0 = arith.constant 0 : index
    %0 = vector.load %arg3[%c0, %c0_0] : memref<8x256xf32, #tpu.memory_space<vmem>>, vector<8x256xf32>
    %c0_1 = arith.constant 0 : index
    %c0_2 = arith.constant 0 : index
    %1 = vector.load %arg2[%c0_1, %c0_2] : memref<8x1xf32, #tpu.memory_space<vmem>>, vector<8x1xf32>
    %2 = vector.broadcast %1 : vector<8x1xf32> to vector<8x256xf32>
    %3 = arith.mulf %0, %2 : vector<8x256xf32>
    %c0_3 = arith.constant 0 : index
    %c0_4 = arith.constant 0 : index
    %4 = vector.load %arg4[%c0_3, %c0_4] : memref<8x256xf32, #tpu.memory_space<vmem>>, vector<8x256xf32>
    tpu.vector_store %arg4[%c0_3, %c0_4], %3 {strides = array<i32>} : memref<8x256xf32, #tpu.memory_space<vmem>>, vector<8x256xf32>,
    return
  }
  func.func @transform_0(%arg0: i32, %arg1: i32) -> (i32, i32) {
    %c0_i32 = arith.constant 0 : i32
    %c0_i32_0 = arith.constant 0 : i32
    return %arg0, %c0_i32 : i32, i32
  }
  func.func @transform_1(%arg0: i32, %arg1: i32) -> (i32, i32) {
    %c0_i32 = arith.constant 0 : i32
    return %arg0, %arg1 : i32, i32
  }
  func.func @transform_2(%arg0: i32, %arg1: i32) -> (i32, i32) {
    %c0_i32 = arith.constant 0 : i32
    return %arg0, %arg1 : i32, i32
  }
}

</mosaic_0001>

<bundles_post_ra>
// kernel: tpu_custom_call.1
= control target key start
LH: loop header
LB: loop body
LE: loop exit
PB: predicated region body
PF: predicated region fallthrough
CT: control target
= control target key end

     0   :  { %7 = vsyncpa [#allocation3], 0  ;;  %s126_s0 = inlined_call_operand.vmem [shape: f32[8,1], index: 0, kind: input, shape index: {}]   ;;  %s127_s1 = inlined_call_operand.hbm [shape: f32[8,256], index: 1, kind: input, shape index: {}]   ;;  %s128_s2 = inlined_call_operand.hbm [shape: f32[8,256], index: 2, kind: output, shape index: {}]  }
   0x1   :  { %8 = vsyncpa [#allocation4], 0  ;;  %s99_s9 = smov [#allocation2]  }
   0x2   :  { %s17_s10 = sshll.u32 %s99_s9, 4  ;;  %s18_s10 = int_to_ptr.vmem [resolvable:$true] %s17_s10 }
   0x3   :  { %s63_s11 = scalar_lea.vmem %s18_s10, 256  ;;  %p68_p1 = scmp.lt.s32.totalorder %s18_s10, %s18_s10 }
   0x4   :  { %p64_p0 = scmp.ne.s32.totalorder %s18_s10, %s63_s11  ;;  %p69_p2 = scmp.lt.s32.totalorder %s63_s11, %s63_s11 }
   0x6   :  { %p70_p3 = por %p69_p2, %p68_p1 }
   0x8   :  { %p71_p4 = pnand %p70_p3, %p64_p0 }
   0xa   :  { %74 = shalt.err (!%p71_p4)
}
   0xb   :  { %20 = dma.hbm_to_vmem [thread:$0]  %s127_s1, 256, %s18_s10, [#allocation3]  }
   0xc   :  { %95 = dma.done.wait [#allocation3], 256  }
   0xd   :  { %96 = vsyncadd [#allocation3], 4294967040  ;;  %v100_v0 = vmov 0   ;;  %v26_v1 = vld [vmem:[%s126_s0] sm:$0xff]  ;;  %v25_v3 = vld [vmem:[#allocation2 + $0x8] sm:$0xff]  ;;  %s101_s16 = smov [#allocation5]  }
   0xe   :  { %54 = vset.pattern.permute.xlu0 %v100_v0  ;;  %v24_v2 = vld [vmem:[#allocation2] sm:$0xff]  ;;  %s42_s17 = sshll.u32 %s101_s16, 4  ;;  %s43_s17 = int_to_ptr.vmem [resolvable:$true] %s42_s17 }
   0xf   :  { %29 = vperm.xlu0 %54, %v26_v1   ;;  %s75_s1 = scalar_lea.vmem %s43_s17, 256  ;;  %p80_p6 = scmp.lt.s32.totalorder %s43_s17, %s43_s17 }
  0x10   :  { %p76_p5 = scmp.ne.s32.totalorder %s43_s17, %s75_s1  ;;  %p81_p7 = scmp.lt.s32.totalorder %s75_s1, %s75_s1 }
  0x12   :  { %p82_p8 = por %p81_p7, %p80_p6 }
  0x14   :  { %p83_p9 = pnand %p82_p8, %p76_p5 }
  0x8a   :  { %v30_v4 = vpop.permute.xlu0 %29 }
  0x8b   :  { %v32_v5 = vmul.f32 %v30_v4, %v24_v2  ;;  %v33_v6 = vmul.f32 %v30_v4, %v25_v3 }
  0x8d   :  { %34 = vst [vmem:[#allocation5] sm:$0xff] %v32_v5  ;;  %35 = vst [vmem:[#allocation5 + $0x8] sm:$0xff] %v33_v6 }
  0x8e   :  { %86 = shalt.err (!%p83_p9)
}
  0x8f   :  { %45 = dma.vmem_to_hbm [thread:$0]  %s43_s17, 256, %s128_s2, [#allocation4]  }
  0x90   :  { %97 = dma.done.wait [#allocation4], 256  }
  0x91   :  { %98 = vsyncadd [#allocation4], 4294967040 }
  0x92   :  { %49 = vsyncpa [#allocation3], 1 }
  0x93   :  { %50 = vsyncpa [#allocation4], 1 }

</bundles_post_ra>
